<compile_context>
chip_gen: v7x
topology: tpu7x:2x2x1
jax: 0.10.0
libtpu: 0.0.40
codegen_flags: <defaults>
</compile_context>

<pallas_src>
import functools

import jax
import jax.numpy as jnp
from jax.experimental import pallas as pl
from jax.experimental.pallas import tpu as pltpu


def _round_up(x, m):
    return ((x + m - 1) // m) * m


def _mean_field_nll_kernel(c_ref, w_ref, x_ref, o_ref, *, precision):
    # c_ref: SMEM (1,)   f32 : -sum_d log1p(-p_d)
    # w_ref: VMEM (1, D) f32 : log1p(-p_d) - log(p_d)   (negated logit)
    # x_ref: VMEM (TB, D)    : latent tile (native dtype)
    # o_ref: VMEM (1, TB) f32: per-row NLL, lane-dense
    x = x_ref[...]
    if x.dtype != jnp.float32:
        # TODO(synk): for bf16 callers, replace this full-tile upcast with a hi/lo
        # bf16 split of w and two accumulating bf16 MXU passes into f32.
        x = x.astype(jnp.float32)
    # (1, D) . (TB, D)^T -> (1, TB): lane-dense result row; the transposed RHS is
    # the standard flash-attention q.k^T form, so the streamed tile is consumed by
    # the MXU directly without an XLU transpose.
    s = jax.lax.dot_general(
        w_ref[...], x,
        dimension_numbers=(((1,), (1,)), ((), ())),
        preferred_element_type=jnp.float32,
        precision=precision,
    )
    o_ref[...] = s + c_ref[0]


def mean_field_nll(params, latent, *, vmem_tile_bytes=8 << 20,
                   precision=jax.lax.Precision.HIGHEST):
    """params: (D,) probabilities, latent: (B, D) float. Returns nll (B,), f32.

    `precision` may be lowered (e.g. on v5e) if the caller's tolerance allows.
    """
    B, D = latent.shape

    # Hoisted parameter transforms (tiny D-length ops, amortized over all rows).
    # Clamp logs at -100 like torch.nn.BCELoss so params near {0,1} stay finite.
    p = params.astype(jnp.float32)
    logp = jnp.maximum(jnp.log(p), -100.0)
    log1mp = jnp.maximum(jnp.log1p(-p), -100.0)
    w = (log1mp - logp).reshape(1, D)          # (1, D) negated-logit weights
    c = (-jnp.sum(log1mp)).reshape(1)          # (1,) scalar -> SMEM

    # Batch tile sized purely by bytes (per double-buffered latent block).
    itemsize = jnp.dtype(latent.dtype).itemsize
    rows_fit = max(int(vmem_tile_bytes) // max(D * itemsize, 1), 8)
    if rows_fit >= B:
        tb = _round_up(B, 8)                   # single (possibly partial) block
        grid_b = 1
    else:
        tb = max((rows_fit // 128) * 128, 128)  # lane-aligned output blocks
        grid_b = pl.cdiv(B, tb)
        # TODO(synk): if even a (128, D) tile overflows VMEM (very large D), add a
        # trailing "arbitrary" reduction grid axis over D with a (1, tb) accumulator.
    out_cols = grid_b * tb                     # over-allocate only the tiny output

    # Explicit scoped-VMEM budget: 2x double-buffered latent blocks + f32 upcast
    # temp (bf16 callers only) + headroom. Never below the 32 MiB default; with the
    # default 8 MiB tile this stays within v7x's 64 MiB physical VMEM.
    per_buf = tb * D * itemsize
    upcast_tmp = tb * D * 4 if itemsize < 4 else 0
    vmem_limit = max(2 * per_buf + upcast_tmp + (6 << 20), 32 << 20)

    kernel = functools.partial(_mean_field_nll_kernel, precision=precision)
    out = pl.pallas_call(
        kernel,
        out_shape=jax.ShapeDtypeStruct((1, out_cols), jnp.float32),
        grid_spec=pltpu.PrefetchScalarGridSpec(
            num_scalar_prefetch=0,
            grid=(grid_b,),
            in_specs=[
                pl.BlockSpec(memory_space=pltpu.MemorySpace.SMEM),  # c (scalar)
                pl.BlockSpec((1, D), lambda i: (0, 0)),             # w: fetched once
                pl.BlockSpec((tb, D), lambda i: (i, 0)),            # latent tile
            ],
            out_specs=pl.BlockSpec((1, tb), lambda i: (0, i)),      # lane-dense row
        ),
        compiler_params=pltpu.CompilerParams(
            # TODO(synk): verify on v7x that the batch axis actually shards across
            # both TensorCores; if not, switch to CORE_PARALLEL / explicit core split.
            dimension_semantics=("parallel",),
            vmem_limit_bytes=int(vmem_limit),
        ),
    )(c, w, latent)
    return out[0, :B]
    # TODO(synk): for very small D, a caller-provided (D, B) layout would restore
    # full lane density; not done here to keep the (B, D) module interface.


if __name__ == "__main__":
    key = jax.random.PRNGKey(0)
    k_param, k1, k2, k3 = jax.random.split(key, 4)

    def reference(params, latent):
        p = params[None, :].astype(jnp.float32)
        x = latent.astype(jnp.float32)
        return jnp.sum(-(x * jnp.log(p) + (1.0 - x) * jnp.log1p(-p)), axis=1)

    # 1) Small case: single (partial) block, grid of 1, batch not a multiple of 8.
    batch, dim_latent = 4, 32
    params = jax.random.uniform(k_param, (dim_latent,), minval=0.2, maxval=0.8,
                                dtype=jnp.float32)
    latent = jax.random.uniform(k1, (batch, dim_latent), dtype=jnp.float32)
    nll = jax.block_until_ready(mean_field_nll(params, latent))
    ref = reference(params, latent)
    assert nll.shape == (batch,)
    assert jnp.allclose(nll, ref, rtol=2e-5, atol=2e-5), (nll, ref)

    # 2) Ragged multi-tile case: tb=128, grid=3, partial last block, NO padding copy.
    batch2, dim2 = 300, 160
    params2 = jax.random.uniform(k_param, (dim2,), minval=0.2, maxval=0.8,
                                 dtype=jnp.float32)
    latent2 = jax.random.uniform(k2, (batch2, dim2), dtype=jnp.float32)
    nll2 = jax.block_until_ready(
        mean_field_nll(params2, latent2, vmem_tile_bytes=96 * 1024))
    ref2 = reference(params2, latent2)
    assert nll2.shape == (batch2,)
    assert jnp.allclose(nll2, ref2, rtol=2e-5, atol=2e-5), (
        float(jnp.max(jnp.abs(nll2 - ref2))),)

    # 3) Exactly-divisible multi-tile case: tb=128, grid=2.
    batch3, dim3 = 256, 64
    params3 = jax.random.uniform(k_param, (dim3,), minval=0.2, maxval=0.8,
                                 dtype=jnp.float32)
    latent3 = jax.random.uniform(k3, (batch3, dim3), dtype=jnp.float32)
    nll3 = jax.block_until_ready(
        mean_field_nll(params3, latent3, vmem_tile_bytes=128 * 64 * 4))
    ref3 = reference(params3, latent3)
    assert nll3.shape == (batch3,)
    assert jnp.allclose(nll3, ref3, rtol=2e-5, atol=2e-5)

    print("KERNEL_OK")
</pallas_src>

<mosaic_0001>
module attributes {stable_mosaic.version = 11 : i64} {
  func.func @_mean_field_nll_kernel(%arg0: i32, %arg1: memref<1xf32, #tpu.memory_space<smem>>, %arg2: memref<1x32xf32, #tpu.memory_space<vmem>>, %arg3: memref<8x32xf32, #tpu.memory_space<vmem>>, %arg4: memref<1x8xf32, #tpu.memory_space<vmem>>) attributes {dimension_semantics = [#tpu.dimension_semantics<parallel>], iteration_bounds = array<i64: 1>, scalar_prefetch = 0 : i64, scratch_operands = 0 : i64, tpu.core_type = #tpu.core_type<tc>, window_params = [{transform_indices = @transform_0, window_bounds = array<i64: 1>}, {pipeline_mode = #tpu.pipeline_mode<synchronous>, transform_indices = @transform_1, window_bounds = array<i64: 1, 32>}, {transform_indices = @transform_2, window_bounds = array<i64: 8, 32>}, {transform_indices = @transform_3, window_bounds = array<i64: 1, 8>}]} {
    %c0 = arith.constant 0 : index
    %c0_0 = arith.constant 0 : index
    %0 = vector.load %arg3[%c0, %c0_0] : memref<8x32xf32, #tpu.memory_space<vmem>>, vector<8x32xf32>
    %c0_1 = arith.constant 0 : index
    %c0_2 = arith.constant 0 : index
    %1 = vector.load %arg2[%c0_1, %c0_2] : memref<1x32xf32, #tpu.memory_space<vmem>>, vector<1x32xf32>
    %cst = arith.constant dense<0.000000e+00> : vector<1x8xf32>
    %2 = tpu.matmul %1, %0, %cst {dimension_numbers = #tpu.dot_dimension_numbers<[1], [1], [0], [0], [0, 0, 1, 0], [], []>, precision = #tpu.contract_precision<fp32>} : vector<1x32xf32>, vector<8x32xf32>, vector<1x8xf32> -> vector<1x8xf32>
    %c0_3 = arith.constant 0 : index
    %3 = memref.load %arg1[%c0_3] : memref<1xf32, #tpu.memory_space<smem>>
    %4 = vector.broadcast %3 : f32 to vector<1x8xf32>
    %5 = arith.addf %2, %4 : vector<1x8xf32>
    %c0_4 = arith.constant 0 : index
    %c0_5 = arith.constant 0 : index
    %6 = vector.load %arg4[%c0_4, %c0_5] : memref<1x8xf32, #tpu.memory_space<vmem>>, vector<1x8xf32>
    tpu.vector_store %arg4[%c0_4, %c0_5], %5 {strides = array<i32>} : memref<1x8xf32, #tpu.memory_space<vmem>>, vector<1x8xf32>,
    return
  }
  func.func @transform_0(%arg0: i32) -> i32 {
    %c0_i32 = arith.constant 0 : i32
    %c0_i32_0 = arith.constant 0 : i32
    return %c0_i32 : i32
  }
  func.func @transform_1(%arg0: i32) -> (i32, i32) {
    %c0_i32 = arith.constant 0 : i32
    %c0_i32_0 = arith.constant 0 : i32
    %c0_i32_1 = arith.constant 0 : i32
    return %c0_i32, %c0_i32_0 : i32, i32
  }
  func.func @transform_2(%arg0: i32) -> (i32, i32) {
    %c0_i32 = arith.constant 0 : i32
    %c0_i32_0 = arith.constant 0 : i32
    return %arg0, %c0_i32 : i32, i32
  }
  func.func @transform_3(%arg0: i32) -> (i32, i32) {
    %c0_i32 = arith.constant 0 : i32
    %c0_i32_0 = arith.constant 0 : i32
    return %c0_i32, %arg0 : i32, i32
  }
}

</mosaic_0001>

<bundles_post_ra>
// kernel: tpu_custom_call.1
= control target key start
LH: loop header
LB: loop body
LE: loop exit
PB: predicated region body
PF: predicated region fallthrough
CT: control target
= control target key end

     0   :  { %vm20_vm0 = vcmask 261120   ;;  %v568_v2 = vmov 0.0   ;;  %s618_s0 = inlined_call_operand.<no memory space> [shape: f32[1], index: 0, kind: input, shape index: {}]   ;;  %s619_s1 = inlined_call_operand.vmem [shape: f32[1,32], index: 1, kind: input, shape index: {}]   ;;  %s620_s2 = inlined_call_operand.vmem [shape: f32[4,32], index: 2, kind: input, shape index: {}]   ;;  %s621_s3 = inlined_call_operand.hbm [shape: f32[1,8], index: 3, kind: output, shape index: {}]  }
   0x1   :  { %v16_v0 = vld [vmem:[%s620_s2] sm:$0xff]  ;;  %516 = vmatprep.subr.mxu0 %v568_v2  ;;  %501 = vmatprep.subr.mxu1 %v568_v2 }
   0x2   :  { %v17_v1 = vld [vmem:[%s619_s1] sm:$0x1]  ;;  %v25_v3 = vsel %vm20_vm0, %v16_v0, 0 }
   0x3   :  { %v22_v4 = vsel %vm20_vm0, %v17_v1, 0 }
   0x4   :  { %9 = vsyncpa [#allocation4], 0  ;;  %v28_v5 = vand.u32 4294901760, %v25_v3  ;;  %vm569_vm1 = vmmov 0   ;;  %v93_v6 = vand.u32 4294901760, %v22_v4  ;;  %v19_v17 = vstv %s618_s0  ;;  %s570_s16 = smov [#allocation3]  }
   0x5   :  { %518 = vmatprep.mubr.msk.f32.mxu0 %vm569_vm1, %v568_v2  ;;  %503 = vmatprep.mubr.msk.f32.mxu1 %vm569_vm1, %v568_v2  ;;  %s481_s17 = sshll.u32 %s570_s16, 4  ;;  %vm473_vm2 = vcmask 57344   ;;  %s482_s17 = int_to_ptr.vmem [resolvable:$true] %s481_s17 }
   0x6   :  { %v105_v7 = vsub.f32 %v25_v3, %v28_v5  ;;  %517 = vmatpush3.xpose.msra.mxu0 %v28_v5  ;;  %502 = vmatpush3.xpose.msra.mxu1 %v28_v5  ;;  %v94_v8 = vsub.f32 %v22_v4, %v93_v6  ;;  %s544_s18 = scalar_lea.vmem %s482_s17, 16  ;;  %s548_s19 = scalar_lea.vmem %s482_s17, 32 }
   0x7   :  { %506 = vmatprep.subr.mxu1 %v568_v2  ;;  %521 = vmatprep.subr.mxu0 %v568_v2  ;;  %p545_p0 = scmp.ne.s32.totalorder %s482_s17, %s544_s18  ;;  %p549_p1 = scmp.lt.s32.totalorder %s482_s17, %s482_s17 }
   0x8   :  { %v95_v9 = vand.u32 4294901760, %v94_v8  ;;  %v106_v10 = vand.u32 4294901760, %v105_v7  ;;  %p550_p2 = scmp.lt.s32.totalorder %s548_s19, %s544_s18 }
   0xa   :  { %519 = vmatmul.mubr.f32.vlgmr.msra.gmra.mrb[0].mxu0 %v95_v9  ;;  %v96_v11 = vsub.f32 %v94_v8, %v95_v9  ;;  %v107_v12 = vsub.f32 %v105_v7, %v106_v10  ;;  %p551_p3 = por %p550_p2, %p549_p1 }
   0xb   :  { %522 = vmatpush3.xpose.msra.mxu0 %v106_v10  ;;  %523 = vmatprep.mubr.msk.f32.mxu0 %vm569_vm1, %v568_v2 }
   0xc   :  { %v97_v13 = vand.u32 4294901760, %v96_v11  ;;  %v108_v14 = vand.u32 4294901760, %v107_v12  ;;  %526 = vmatprep.subr.mxu0 %v568_v2  ;;  %p552_p4 = pnand %p551_p3, %p545_p0 }
   0xe   :  { %504 = vmatmul.mubr.f32.vlgmr.msra.gmra.mrb[0].mxu1 %v97_v13 }
   0xf   :  { %507 = vmatpush3.xpose.msra.mxu1 %v108_v14  ;;  %508 = vmatprep.mubr.msk.f32.mxu1 %vm569_vm1, %v568_v2 }
  0x10   :  { %511 = vmatprep.subr.mxu1 %v568_v2 }
  0x12   :  { %524 = vmatmul.mubr.f32.vlgmr.msra.gmra.mrb[0].mxu0 %v93_v6 }
  0x13   :  { %527 = vmatpush3.xpose.msra.mxu0 %v28_v5  ;;  %528 = vmatprep.mubr.msk.f32.mxu0 %vm569_vm1, %v568_v2 }
  0x16   :  { %509 = vmatmul.mubr.f32.vlgmr.msra.gmra.mrb[0].mxu1 %v93_v6 }
  0x17   :  { %512 = vmatpush3.xpose.msra.mxu1 %v105_v7  ;;  %513 = vmatprep.mubr.msk.f32.mxu1 %vm569_vm1, %v568_v2 }
  0x1a   :  { %529 = vmatmul.mubr.f32.vlgmr.msra.gmra.mrb[0].mxu0 %v93_v6 }
  0x1e   :  { %514 = vmatmul.mubr.f32.vlgmr.msra.gmra.mrb[0].mxu1 %v94_v8 }
  0xed   :  { %v469_v15 = vpop.f32.mrb[0].mxu0 }
  0xee   :  { %v530_v16 = vpop.f32.mrb[1].mxu0 }
  0xf1   :  { %v249_v18 = vpop.f32.mrb[0].mxu1 }
  0xf2   :  { %v531_v19 = vadd.f32 %v249_v18, %v19_v17  ;;  %v515_v20 = vpop.f32.mrb[1].mxu1 }
  0xf4   :  { %v532_v21 = vadd.f32 %v531_v19, %v469_v15 }
  0xf6   :  { %474 = vst.msk [vmem:[#allocation3] sm:$0x1] %vm473_vm2, %v532_v21 }
  0xf7   :  { %555 = shalt.err (!%p552_p4)
}
  0xf8   :  { %s556_s0 = scalar_lea.hbm %s621_s3, 16 }
  0xf9   :  { %p557_p5 = scmp.ne.s32.totalorder %s621_s3, %s556_s0  ;;  %p560_p6 = scmp.lt.u32.totalorder %s556_s0, %s621_s3 }
  0xfb   :  { %p562_p7 = pnand %p560_p6, %p557_p5 }
  0xfd   :  { %565 = shalt.err (!%p562_p7)
}
  0xfe   :  { %484 = dma.vmem_to_hbm [thread:$0]  %s482_s17, 16, %s621_s3, [#allocation4]  }
  0xff   :  { %566 = dma.done.wait [#allocation4], 16  }
 0x100   :  { %567 = vsyncadd [#allocation4], 4294967280 }
 0x101   :  { %488 = vsyncpa [#allocation4], 1 }

</bundles_post_ra>
